<compile_context>
chip_gen: v7x
topology: tpu7x:2x2x1
jax: 0.10.0
libtpu: 0.0.40
codegen_flags: <defaults>
</compile_context>

<pallas_src>
import functools

import jax
import jax.numpy as jnp
from jax.experimental import pallas as pl
from jax.experimental.pallas import tpu as pltpu

EPS = 1e-5                        # nn.BatchNorm2d default eps
BN_BLOCK_BYTES = 4 * 1024 * 1024  # target bytes per BN-reduction block


def _vmem_limit_bytes():
    """Scoped-VMEM ceiling derived from the device, with a safe fallback."""
    cap = 64 * 1024 * 1024
    try:
        cap = int(getattr(pltpu.get_tpu_info(), "vmem_capacity_bytes", cap))
    except Exception:
        pass
    return min(int(cap * 3 // 4), 96 * 1024 * 1024)


# -----------------------------------------------------------------------------
# Kernel 1: BatchNorm2d (affine=False, training-mode batch statistics).
# Tiled reduction; sum / sum-of-squares accumulate directly into the
# (VMEM-resident) outputs; the tiny fold/finalize step runs in the wrapper.
# -----------------------------------------------------------------------------
def bn_sums_kernel(x_ref, sum_ref, sq_ref, *, rows_valid, tile_rows, ragged):
    i = pl.program_id(0)

    @pl.when(i == 0)
    def _init():
        sum_ref[...] = jnp.zeros_like(sum_ref)
        sq_ref[...] = jnp.zeros_like(sq_ref)

    x = x_ref[...]                                        # (tile_rows, fold*C) f32
    if ragged:
        # Grid is cdiv(rows, tile_rows): mask the out-of-range tail of the last
        # block instead of materializing a zero-padded copy of x in HBM.
        row = jax.lax.broadcasted_iota(jnp.int32, x.shape, 0) + i * tile_rows
        x = jnp.where(row < rows_valid, x, 0.0)
    sum_ref[...] += jnp.sum(x, axis=0, keepdims=True)
    sq_ref[...] += jnp.sum(x * x, axis=0, keepdims=True)


def _bn_stats(x_nhwc, vmem_limit):
    n, h, w, c = x_nhwc.shape
    nrows = n * h * w

    # Fold groups of rows into lanes when C < 128 so the reduction uses full vregs.
    fold = 1
    if c < 128:
        fold = max(1, 128 // c)
        while fold > 1 and nrows % fold:
            fold -= 1
    rows = nrows // fold
    x2 = x_nhwc.reshape(rows, fold * c)          # contiguous reshape: no HBM copy

    row_bytes = 4 * fold * c
    tile_rows = max(8, (BN_BLOCK_BYTES // row_bytes) // 8 * 8)
    if tile_rows >= rows:
        tile_rows = rows
    num_blocks = pl.cdiv(rows, tile_rows)
    ragged = (rows % tile_rows) != 0

    s, q = pl.pallas_call(
        functools.partial(bn_sums_kernel, rows_valid=rows,
                          tile_rows=tile_rows, ragged=ragged),
        out_shape=(jax.ShapeDtypeStruct((1, fold * c), jnp.float32),
                   jax.ShapeDtypeStruct((1, fold * c), jnp.float32)),
        grid=(num_blocks,),
        in_specs=[pl.BlockSpec((tile_rows, fold * c), lambda i: (i, 0))],
        out_specs=(pl.BlockSpec((1, fold * c), lambda i: (0, 0)),
                   pl.BlockSpec((1, fold * c), lambda i: (0, 0))),
        compiler_params=pltpu.CompilerParams(
            dimension_semantics=("arbitrary",),
            vmem_limit_bytes=vmem_limit),
    )(x2)

    s = s.reshape(fold, c).sum(axis=0)
    q = q.reshape(fold, c).sum(axis=0)
    mean = s / nrows
    # TODO(synk): shifted / Welford-style accumulation if |mean| >> std.
    var = jnp.maximum(q / nrows - mean * mean, 0.0)
    invstd = jax.lax.rsqrt(var + EPS)
    return mean.reshape(1, c), invstd.reshape(1, c)


# -----------------------------------------------------------------------------
# Kernel 2 (fused): per (batch, row-tile) grid step:
#   stage 1: mlp_shared = Conv3x3(label_nc -> nhidden) + ReLU over TILE_H+2 rows
#            (1-row halo) x padded width as ONE im2col matmul, entirely in VMEM.
#   stage 2: packed gamma|beta Conv3x3 with taps paired to K = 2*nhidden, then
#            normalized = (x - mean) * invstd and out = normalized*(1+g) + b.
# -----------------------------------------------------------------------------
def spade_fused_kernel(seg_ref, x_ref, wsh_ref, bsh_ref, wgb_ref, bgb_ref,
                       mean_ref, invstd_ref, out_ref, actv_ref):
    # seg_ref : (1, TH+4, WP+2, L)  bf16 zero-padded segmap rows for this tile
    # x_ref   : (1, TH,   W,    C)  f32
    # wsh_ref : (9*L, NH)  bf16        bsh_ref: (1, NH)    f32
    # wgb_ref : (9*NH, 2*CP) bf16      bgb_ref: (1, 2*CP)  f32   (gamma|beta)
    # out_ref : (1, TH, W, C) f32
    # actv_ref: (TH+2, WP, NH) bf16 scratch (halo'd shared activation)
    h_idx = pl.program_id(1)
    last_h = pl.num_programs(1) - 1

    th = out_ref.shape[1]
    w = out_ref.shape[2]
    c = out_ref.shape[3]
    nh = bsh_ref.shape[1]
    cp = bgb_ref.shape[1] // 2
    th2, wp = actv_ref.shape[0], actv_ref.shape[1]

    # ---- stage 1: shared conv3x3 + ReLU as ONE im2col matmul (K = 9*L) --------
    taps = [seg_ref[0, dy:dy + th2, dx:dx + wp, :]
            for dy in range(3) for dx in range(3)]
    patch = jnp.concatenate(taps, axis=-1).reshape(th2 * wp, -1)    # (M1, 9*L) bf16
    actv = jnp.dot(patch, wsh_ref[...], preferred_element_type=jnp.float32)
    actv = jnp.maximum(actv + bsh_ref[...], 0.0).reshape(th2, wp, nh)

    # Columns outside the image are the zero padding the gamma/beta convs see:
    # cheap column-mask multiply (rows are handled by tiny strip stores below).
    col = jax.lax.broadcasted_iota(jnp.int32, (1, wp, 1), 1)
    actv = actv * ((col >= 1) & (col <= w)).astype(jnp.float32)
    actv_ref[...] = actv.astype(jnp.bfloat16)

    zrow = jnp.zeros((1, wp, nh), jnp.bfloat16)

    @pl.when(h_idx == 0)
    def _zero_top():
        actv_ref[0:1, :, :] = zrow          # image row -1

    @pl.when(h_idx == last_h)
    def _zero_bottom():
        actv_ref[th + 1:th + 2, :, :] = zrow  # image row H

    # ---- stage 2: packed gamma|beta conv3x3, taps paired to K = 2*NH ----------
    # Value-level accumulation (first write is `=`): no VMEM scratch RMW; Mosaic
    # may keep the tap sum in the MXU result buffer on v7x.
    def tap(k):
        dy, dx = divmod(k, 3)
        return actv_ref[dy:dy + th, dx:dx + w, :].reshape(th * w, nh)

    # TODO(synk): if the bundle shows per-tap relayout copies from the dx=1,2
    # sublane shifts, do the column shifts with pltpu.roll instead.
    gb = jnp.dot(jnp.concatenate([tap(0), tap(1)], axis=-1),
                 wgb_ref[0:2 * nh, :], preferred_element_type=jnp.float32)
    for g in range(1, 4):
        gb += jnp.dot(jnp.concatenate([tap(2 * g), tap(2 * g + 1)], axis=-1),
                      wgb_ref[2 * g * nh:(2 * g + 2) * nh, :],
                      preferred_element_type=jnp.float32)
    gb += jnp.dot(tap(8), wgb_ref[8 * nh:9 * nh, :],
                  preferred_element_type=jnp.float32)
    gb += bgb_ref[...]                                    # (TH*W, 2*CP) f32

    # ---- normalize + modulate --------------------------------------------------
    xr = x_ref[0].reshape(th * w, c)
    normalized = (xr - mean_ref[...]) * invstd_ref[...]
    out = normalized * (1.0 + gb[:, :c]) + gb[:, cp:cp + c]
    out_ref[...] = out.reshape(1, th, w, c)


# -----------------------------------------------------------------------------
# Wrapper (layout transpose, nearest-neighbor resize, seg halo tiling).
# -----------------------------------------------------------------------------
def _fused_step_bytes(tile_h, w, wp, c, cp, label_nc, nh):
    """Rough per-grid-step VMEM working set of the fused kernel."""
    th2 = tile_h + 2
    m1 = th2 * wp
    m2 = tile_h * w
    x_blk = m2 * c * 4
    out_blk = m2 * c * 4
    seg_blk = (tile_h + 4) * (wp + 2) * label_nc * 2
    weights = 9 * label_nc * nh * 2 + 9 * nh * 2 * cp * 2 + (nh + 2 * cp + 2 * c) * 4
    actv = th2 * wp * nh * 2                         # bf16 scratch
    stage1 = m1 * (9 * label_nc) * 2 + m1 * nh * 4   # im2col patch + f32 activation
    stage2 = m2 * 2 * nh * 2 + m2 * 2 * cp * 4       # paired patch + gamma|beta acc
    # Inputs/outputs are double-buffered by the pipeline; values/scratch are not.
    return 2 * (x_blk + out_blk + seg_blk + weights) + actv + stage1 + stage2


def _pick_tile_h(h, n, budget_bytes, est):
    divisors = [d for d in range(1, h + 1) if h % d == 0]
    feasible = [d for d in divisors if est(d) <= budget_bytes] or [1]
    # Keep >= 2 grid points when possible so megacore (v7x) can still split.
    multi = [d for d in feasible if n * (h // d) >= 2]
    return max(multi) if multi else max(feasible)


def spade_forward(x_nchw, segmap_nchw, params, *, tile_h=None):
    n, c, h, w = x_nchw.shape
    label_nc = params["w_shared"].shape[1]
    nhidden = params["w_shared"].shape[2]
    vmem_limit = _vmem_limit_bytes()

    # TODO(synk): keep the surrounding graph NHWC (or write NCHW directly from
    # the kernel via an in-kernel transpose) to drop these HBM transpose passes.
    x = jnp.transpose(x_nchw, (0, 2, 3, 1)).astype(jnp.float32)           # NHWC
    seg = jnp.transpose(segmap_nchw, (0, 2, 3, 1)).astype(jnp.bfloat16)   # NHWC

    # F.interpolate(segmap, size=(H, W), mode='nearest')
    sh, sw = seg.shape[1], seg.shape[2]
    seg = seg[:, (jnp.arange(h) * sh) // h][:, :, (jnp.arange(w) * sw) // w]

    # ---------------- BatchNorm2d(affine=False) statistics (tiled) -------------
    mean, invstd = _bn_stats(x, vmem_limit)

    # ---------------- fused conv/conv/normalize/modulate -----------------------
    # Pad each half of the packed gamma|beta Cout to a 128-lane boundary when
    # norm_nc < 128 so the gamma/beta split lands on vreg lane boundaries.
    cp = 128 if c <= 128 else c
    wp = ((w + 2 + 7) // 8) * 8         # activation-buffer width (multiple of 8)

    if tile_h is None:
        est = functools.partial(_fused_step_bytes, w=w, wp=wp, c=c, cp=cp,
                                label_nc=label_nc, nh=nhidden)
        tile_h = _pick_tile_h(h, n, vmem_limit // 2, est)
    num_h = h // tile_h

    # Halo'd, zero-padded segmap tiles: tile (i, t) holds padded-seg rows
    # [t*tile_h, t*tile_h + tile_h + 4).  Only the small label_nc-wide segmap is
    # duplicated; the nhidden-wide activation never leaves VMEM.
    # TODO(synk): index overlapping row windows directly (Element-mode rows or a
    # manual DMA from a pl.ANY ref) to avoid this small HBM duplication.
    seg_pad = jnp.pad(seg, ((0, 0), (2, 2), (2, wp - w), (0, 0)))  # (N, H+4, WP+2, L)
    row_idx = (jnp.arange(num_h) * tile_h)[:, None] + jnp.arange(tile_h + 4)[None, :]
    seg_tiles = seg_pad[:, row_idx].reshape(n * num_h, tile_h + 4, wp + 2, label_nc)

    # im2col-packed bf16 weights; gamma|beta packed along Cout (per-half padded).
    w_sh = params["w_shared"].reshape(9 * label_nc, nhidden).astype(jnp.bfloat16)
    b_sh = params["b_shared"].astype(jnp.float32)

    def _pad_cout(a, width):
        if a.shape[-1] == width:
            return a
        return jnp.pad(a, [(0, 0)] * (a.ndim - 1) + [(0, width - a.shape[-1])])

    w_gb = jnp.concatenate([_pad_cout(params["w_gamma"], cp),
                            _pad_cout(params["w_beta"], cp)], axis=-1)
    w_gb = w_gb.reshape(9 * nhidden, 2 * cp).astype(jnp.bfloat16)
    b_gb = jnp.concatenate([_pad_cout(params["b_gamma"], cp),
                            _pad_cout(params["b_beta"], cp)],
                           axis=-1).astype(jnp.float32)

    # TODO(synk): single-buffer the constant-index weight/stat operands
    # (pl.Buffered(1)) to free VMEM headroom on v7x's 64 MiB part.
    out = pl.pallas_call(
        spade_fused_kernel,
        out_shape=jax.ShapeDtypeStruct((n, h, w, c), jnp.float32),
        grid=(n, num_h),
        in_specs=[
            pl.BlockSpec((1, tile_h + 4, wp + 2, label_nc),
                         lambda i, t: (i * num_h + t, 0, 0, 0)),
            pl.BlockSpec((1, tile_h, w, c), lambda i, t: (i, t, 0, 0)),
            pl.BlockSpec((9 * label_nc, nhidden), lambda i, t: (0, 0)),
            pl.BlockSpec((1, nhidden), lambda i, t: (0, 0)),
            pl.BlockSpec((9 * nhidden, 2 * cp), lambda i, t: (0, 0)),
            pl.BlockSpec((1, 2 * cp), lambda i, t: (0, 0)),
            pl.BlockSpec((1, c), lambda i, t: (0, 0)),
            pl.BlockSpec((1, c), lambda i, t: (0, 0)),
        ],
        out_specs=pl.BlockSpec((1, tile_h, w, c), lambda i, t: (i, t, 0, 0)),
        scratch_shapes=[pltpu.VMEM((tile_h + 2, wp, nhidden), jnp.bfloat16)],
        compiler_params=pltpu.CompilerParams(
            dimension_semantics=("parallel", "parallel"),
            vmem_limit_bytes=vmem_limit),
    )(seg_tiles, x, w_sh, b_sh, w_gb, b_gb, mean, invstd)

    # TODO(synk): for norm_nc < 128, present a lane-dense (N, H, W*C) output
    # block to avoid masked partial stores.
    return jnp.transpose(out, (0, 3, 1, 2))   # back to NCHW


# -----------------------------------------------------------------------------
# Pure-JAX reference.  match_kernel_precision=True mirrors the kernel's
# bf16-operand / f32-accumulate matmuls for a tight numerical check.
# -----------------------------------------------------------------------------
def spade_reference(x_nchw, segmap_nchw, params, *, match_kernel_precision=False):
    x = jnp.transpose(x_nchw, (0, 2, 3, 1)).astype(jnp.float32)
    seg = jnp.transpose(segmap_nchw, (0, 2, 3, 1)).astype(jnp.float32)
    _, h, w, _ = x.shape
    sh, sw = seg.shape[1], seg.shape[2]
    seg = seg[:, (jnp.arange(h) * sh) // h][:, :, (jnp.arange(w) * sw) // w]

    mean = jnp.mean(x, axis=(0, 1, 2), keepdims=True)
    var = jnp.mean((x - mean) ** 2, axis=(0, 1, 2), keepdims=True)
    normalized = (x - mean) * jax.lax.rsqrt(var + EPS)

    def maybe_bf16(a):
        return a.astype(jnp.bfloat16).astype(jnp.float32) if match_kernel_precision else a

    def conv3x3(inp, w9, b):
        kw = maybe_bf16(w9).reshape(3, 3, w9.shape[1], w9.shape[2])   # HWIO
        y = jax.lax.conv_general_dilated(
            maybe_bf16(inp), kw, (1, 1), "SAME",
            dimension_numbers=("NHWC", "HWIO", "NHWC"),
            precision=jax.lax.Precision.HIGHEST)
        return y + b.reshape(1, 1, 1, -1)

    actv = jnp.maximum(conv3x3(seg, params["w_shared"], params["b_shared"]), 0.0)
    actv = maybe_bf16(actv)
    gamma = conv3x3(actv, params["w_gamma"], params["b_gamma"])
    beta = conv3x3(actv, params["w_beta"], params["b_beta"])
    out = normalized * (1 + gamma) + beta
    return jnp.transpose(out, (0, 3, 1, 2))


def init_params(key, norm_nc, label_nc, nhidden=128):
    k1, k2, k3, k4, k5, k6 = jax.random.split(key, 6)
    # weight layout: (tap = dy*3+dx, Cin, Cout)  <->  torch (Cout, Cin, dy, dx)
    return {
        "w_shared": 0.10 * jax.random.normal(k1, (9, label_nc, nhidden), jnp.float32),
        "b_shared": 0.10 * jax.random.normal(k2, (1, nhidden), jnp.float32),
        "w_gamma": 0.05 * jax.random.normal(k3, (9, nhidden, norm_nc), jnp.float32),
        "b_gamma": 0.05 * jax.random.normal(k4, (1, norm_nc), jnp.float32),
        "w_beta": 0.05 * jax.random.normal(k5, (9, nhidden, norm_nc), jnp.float32),
        "b_beta": 0.05 * jax.random.normal(k6, (1, norm_nc), jnp.float32),
    }


if __name__ == "__main__":
    norm_nc, label_nc = 4, 4
    N, H, W = 2, 16, 16
    key = jax.random.PRNGKey(0)
    kx, ks, kp = jax.random.split(key, 3)

    x = jax.random.normal(kx, (N, norm_nc, H, W), jnp.float32)        # NCHW, like torch
    segmap = jax.random.normal(ks, (N, label_nc, 8, 8), jnp.float32)  # resized to 16x16
    params = init_params(kp, norm_nc, label_nc)

    out = jax.block_until_ready(spade_forward(x, segmap, params))
    assert out.shape == (N, norm_nc, H, W)

    # Tight check against a reference matching the kernel's bf16-operand,
    # f32-accumulate precision.
    ref_matched = spade_reference(x, segmap, params, match_kernel_precision=True)
    err = float(jnp.max(jnp.abs(out - ref_matched)))
    assert err < 5e-3, f"mismatch vs precision-matched reference: {err}"

    # Loose sanity check against the full-f32 reference (bf16 MXU operands).
    ref_f32 = spade_reference(x, segmap, params)
    err32 = float(jnp.max(jnp.abs(out - ref_f32)))
    assert err32 < 2e-1, f"mismatch vs f32 reference: {err32}"

    print("KERNEL_OK")
</pallas_src>

<mosaic_0001>
module attributes {stable_mosaic.version = 11 : i64} {
  func.func @bn_sums_kernel(%arg0: i32, %arg1: memref<16x128xf32, #tpu.memory_space<vmem>>, %arg2: memref<1x128xf32, #tpu.memory_space<vmem>>, %arg3: memref<1x128xf32, #tpu.memory_space<vmem>>) attributes {dimension_semantics = [#tpu.dimension_semantics<arbitrary>], iteration_bounds = array<i64: 1>, scalar_prefetch = 0 : i64, scratch_operands = 0 : i64, tpu.core_type = #tpu.core_type<tc>, window_params = [{transform_indices = @transform_0, window_bounds = array<i64: 16, 128>}, {pipeline_mode = #tpu.pipeline_mode<synchronous>, transform_indices = @transform_1, window_bounds = array<i64: 1, 128>}, {pipeline_mode = #tpu.pipeline_mode<synchronous>, transform_indices = @transform_2, window_bounds = array<i64: 1, 128>}]} {
    %c0_i32 = arith.constant 0 : i32
    %0 = arith.cmpi eq, %arg0, %c0_i32 : i32
    %1 = arith.extui %0 : i1 to i32
    %c0_i32_0 = arith.constant 0 : i32
    %2 = arith.cmpi ne, %1, %c0_i32_0 : i32
    scf.if %2 {
      %cst_11 = arith.constant 0.000000e+00 : f32
      %15 = vector.broadcast %cst_11 : f32 to vector<1x128xf32>
      %c0_12 = arith.constant 0 : index
      %c0_13 = arith.constant 0 : index
      %16 = vector.load %arg2[%c0_12, %c0_13] : memref<1x128xf32, #tpu.memory_space<vmem>>, vector<1x128xf32>
      tpu.vector_store %arg2[%c0_12, %c0_13], %15 {strides = array<i32>} : memref<1x128xf32, #tpu.memory_space<vmem>>, vector<1x128xf32>,
      %cst_14 = arith.constant 0.000000e+00 : f32
      %17 = vector.broadcast %cst_14 : f32 to vector<1x128xf32>
      %c0_15 = arith.constant 0 : index
      %c0_16 = arith.constant 0 : index
      %18 = vector.load %arg3[%c0_15, %c0_16] : memref<1x128xf32, #tpu.memory_space<vmem>>, vector<1x128xf32>
      tpu.vector_store %arg3[%c0_15, %c0_16], %17 {strides = array<i32>} : memref<1x128xf32, #tpu.memory_space<vmem>>, vector<1x128xf32>,
    } else {
    }
    %c0 = arith.constant 0 : index
    %c0_1 = arith.constant 0 : index
    %3 = vector.load %arg1[%c0, %c0_1] : memref<16x128xf32, #tpu.memory_space<vmem>>, vector<16x128xf32>
    %c0_2 = arith.constant 0 : index
    %c0_3 = arith.constant 0 : index
    %4 = vector.load %arg2[%c0_2, %c0_3] : memref<1x128xf32, #tpu.memory_space<vmem>>, vector<1x128xf32>
    %cst = arith.constant dense<0.000000e+00> : vector<128xf32>
    %5 = vector.multi_reduction <add>, %3, %cst [0] : vector<16x128xf32> to vector<128xf32>
    %6 = vector.shape_cast %5 : vector<128xf32> to vector<1x128xf32>
    %7 = arith.addf %4, %6 : vector<1x128xf32>
    %c0_4 = arith.constant 0 : index
    %c0_5 = arith.constant 0 : index
    %8 = vector.load %arg2[%c0_4, %c0_5] : memref<1x128xf32, #tpu.memory_space<vmem>>, vector<1x128xf32>
    tpu.vector_store %arg2[%c0_4, %c0_5], %7 {strides = array<i32>} : memref<1x128xf32, #tpu.memory_space<vmem>>, vector<1x128xf32>,
    %c0_6 = arith.constant 0 : index
    %c0_7 = arith.constant 0 : index
    %9 = vector.load %arg3[%c0_6, %c0_7] : memref<1x128xf32, #tpu.memory_space<vmem>>, vector<1x128xf32>
    %10 = arith.mulf %3, %3 : vector<16x128xf32>
    %cst_8 = arith.constant dense<0.000000e+00> : vector<128xf32>
    %11 = vector.multi_reduction <add>, %10, %cst_8 [0] : vector<16x128xf32> to vector<128xf32>
    %12 = vector.shape_cast %11 : vector<128xf32> to vector<1x128xf32>
    %13 = arith.addf %9, %12 : vector<1x128xf32>
    %c0_9 = arith.constant 0 : index
    %c0_10 = arith.constant 0 : index
    %14 = vector.load %arg3[%c0_9, %c0_10] : memref<1x128xf32, #tpu.memory_space<vmem>>, vector<1x128xf32>
    tpu.vector_store %arg3[%c0_9, %c0_10], %13 {strides = array<i32>} : memref<1x128xf32, #tpu.memory_space<vmem>>, vector<1x128xf32>,
    return
  }
  func.func @transform_0(%arg0: i32) -> (i32, i32) {
    %c0_i32 = arith.constant 0 : i32
    %c0_i32_0 = arith.constant 0 : i32
    return %arg0, %c0_i32 : i32, i32
  }
  func.func @transform_1(%arg0: i32) -> (i32, i32) {
    %c0_i32 = arith.constant 0 : i32
    %c0_i32_0 = arith.constant 0 : i32
    %c0_i32_1 = arith.constant 0 : i32
    return %c0_i32, %c0_i32_0 : i32, i32
  }
  func.func @transform_2(%arg0: i32) -> (i32, i32) {
    %c0_i32 = arith.constant 0 : i32
    %c0_i32_0 = arith.constant 0 : i32
    %c0_i32_1 = arith.constant 0 : i32
    return %c0_i32, %c0_i32_0 : i32, i32
  }
}

</mosaic_0001>

<bundles_post_ra>
// kernel: tpu_custom_call.1
= control target key start
LH: loop header
LB: loop body
LE: loop exit
PB: predicated region body
PF: predicated region fallthrough
CT: control target
= control target key end

     0   :  { %8 = vsyncpa [#allocation3], 0  ;;  %s228_s0 = inlined_call_operand.hbm [shape: f32[16,128], index: 0, kind: input, shape index: {}]   ;;  %s229_s1 = inlined_call_operand.hbm [shape: f32[1,128], index: 1, kind: output, shape index: {0}]   ;;  %s230_s2 = inlined_call_operand.hbm [shape: f32[1,128], index: 2, kind: output, shape index: {1}]  }
   0x1   :  { %9 = vsyncpa [#allocation4], 0 }
   0x2   :  { %10 = vsyncpa [#allocation7], 0  ;;  %s163_s9 = smov [#allocation2]   ;;  %s91_s13 = scalar_lea.hbm %s228_s0, 256 }
   0x3   :  { %s16_s10 = sshll.u32 %s163_s9, 4  ;;  %p92_p0 = scmp.ne.s32.totalorder %s228_s0, %s91_s13  ;;  %s17_s10 = int_to_ptr.vmem [resolvable:$true] %s16_s10 }
   0x4   :  { %p95_p1 = scmp.lt.u32.totalorder %s91_s13, %s228_s0 }
   0x6   :  { %p97_p2 = pnand %p95_p1, %p92_p0 }
   0x8   :  { %100 = shalt.err (!%p97_p2)
}
   0x9   :  { %s101_s18 = scalar_lea.vmem %s17_s10, 256  ;;  %p106_p4 = scmp.lt.s32.totalorder %s17_s10, %s17_s10 }
   0xa   :  { %p102_p3 = scmp.ne.s32.totalorder %s17_s10, %s101_s18  ;;  %p107_p5 = scmp.lt.s32.totalorder %s101_s18, %s101_s18 }
   0xc   :  { %p108_p6 = por %p107_p5, %p106_p4 }
   0xe   :  { %p109_p7 = pnand %p108_p6, %p102_p3 }
  0x10   :  { %112 = shalt.err (!%p109_p7)
}
  0x11   :  { %s164_s19 = smov 128   ;;  %s165_s20 = smov 8  }
  0x12   :  { %22 = dma.hbm_to_vmem [thread:$0]  %s228_s0, 256, %s17_s10, [#allocation3], %s164_s19, %s164_s19, %s165_s20  }
  0x13   :  { %157 = dma.done.wait [#allocation3], 256  }
  0x14   :  { %158 = vsyncadd [#allocation3], 4294967040  ;;  %v166_v0 = vmov 0.0   ;;  %v32_v1 = vld [vmem:[#allocation2] sm:$0xff]  ;;  %v33_v2 = vld [vmem:[#allocation2 + $0x8] sm:$0xff]  ;;  %s167_s0 = smov [#allocation5]  }
  0x15   :  { %30 = vst [vmem:[#allocation5] sm:$0x1] %v166_v0  ;;  %31 = vst [vmem:[#allocation6] sm:$0x1] %v166_v0  ;;  %v35_v3 = vadd.f32 %v33_v2, %v32_v1  ;;  %v45_v4 = vmul.f32 %v32_v1, %v32_v1  ;;  %v46_v5 = vmul.f32 %v33_v2, %v33_v2  ;;  %s62_s23 = sshll.u32 %s167_s0, 4  ;;  %s168_s24 = smov [#allocation6]   ;;  %s63_s23 = int_to_ptr.vmem [resolvable:$true] %s62_s23 }
  0x16   :  { %s72_s25 = sshll.u32 %s168_s24, 4  ;;  %s113_s26 = scalar_lea.vmem %s63_s23, 16  ;;  %s196_s25 = int_to_ptr.vmem [resolvable:$true] %s72_s25 }
  0x17   :  { %v36_v6 = vrot.slane %v35_v3, 4  ;;  %v47_v7 = vadd.f32 %v46_v5, %v45_v4  ;;  %p114_p8 = scmp.ne.s32.totalorder %s63_s23, %s113_s26  ;;  %s117_s27 = scalar_lea.vmem %s63_s23, 32 }
  0x18   :  { %p118_p9 = scmp.lt.s32.totalorder %s63_s23, %s63_s23  ;;  %p119_p10 = scmp.lt.s32.totalorder %s117_s27, %s113_s26 }
  0x19   :  { %v37_v8 = vadd.f32 %v36_v6, %v35_v3  ;;  %v48_v9 = vrot.slane %v47_v7, 4 }
  0x1a   :  { %p120_p11 = por %p119_p10, %p118_p9 }
  0x1b   :  { %v38_v10 = vrot.slane %v37_v8, 2  ;;  %v49_v11 = vadd.f32 %v48_v9, %v47_v7 }
  0x1c   :  { %v34_v16 = vld [vmem:[#allocation5] sm:$0x1]  ;;  %v44_v19 = vld [vmem:[#allocation6] sm:$0x1]  ;;  %p121_p12 = pnand %p120_p11, %p114_p8 }
  0x1d   :  { %v39_v12 = vadd.f32 %v38_v10, %v37_v8  ;;  %v50_v13 = vrot.slane %v49_v11, 2 }
  0x1f   :  { %v40_v14 = vrot.slane %v39_v12, 1  ;;  %v51_v15 = vadd.f32 %v50_v13, %v49_v11 }
  0x21   :  { %v41_v17 = vadd.f32 %v40_v14, %v39_v12  ;;  %v52_v18 = vrot.slane %v51_v15, 1 }
  0x23   :  { %v42_v20 = vadd.f32 %v41_v17, %v34_v16  ;;  %v53_v21 = vadd.f32 %v52_v18, %v51_v15 }
  0x25   :  { %43 = vst [vmem:[#allocation5] sm:$0x1] %v42_v20  ;;  %v54_v22 = vadd.f32 %v53_v21, %v44_v19 }
  0x26   :  { %124 = shalt.err (!%p121_p12)
}
  0x27   :  { %s125_s30 = scalar_lea.hbm %s229_s1, 16 }
  0x28   :  { %p126_p13 = scmp.ne.s32.totalorder %s229_s1, %s125_s30  ;;  %p129_p0 = scmp.lt.u32.totalorder %s125_s30, %s229_s1 }
  0x2a   :  { %p131_p1 = pnand %p129_p0, %p126_p13 }
  0x2c   :  { %134 = shalt.err (!%p131_p1)
}
  0x2d   :  { %65 = dma.vmem_to_hbm [thread:$0]  %s63_s23, 16, %s229_s1, [#allocation4]   ;;  %55 = vst [vmem:[#allocation6] sm:$0x1] %v54_v22 }
  0x2e   :  { %s135_s9 = scalar_lea.vmem %s196_s25, 16  ;;  %s139_s10 = scalar_lea.vmem %s196_s25, 32 }
  0x2f   :  { %p136_p2 = scmp.ne.s32.totalorder %s196_s25, %s135_s9  ;;  %p140_p3 = scmp.lt.s32.totalorder %s196_s25, %s196_s25 }
  0x30   :  { %p141_p4 = scmp.lt.s32.totalorder %s139_s10, %s135_s9 }
  0x32   :  { %p142_p5 = por %p141_p4, %p140_p3 }
  0x34   :  { %p143_p6 = pnand %p142_p5, %p136_p2 }
  0x36   :  { %146 = shalt.err (!%p143_p6)
}
  0x37   :  { %s147_s13 = scalar_lea.hbm %s230_s2, 16 }
  0x38   :  { %p148_p7 = scmp.ne.s32.totalorder %s230_s2, %s147_s13  ;;  %p151_p8 = scmp.lt.u32.totalorder %s147_s13, %s230_s2 }
  0x3a   :  { %p153_p9 = pnand %p151_p8, %p148_p7 }
  0x3c   :  { %156 = shalt.err (!%p153_p9)
}
  0x3d   :  { %75 = dma.vmem_to_hbm [thread:$0]  %s196_s25, 16, %s230_s2, [#allocation7]  }
  0x3e   :  { %159 = dma.done.wait [#allocation4], 16  }
  0x3f   :  { %160 = vsyncadd [#allocation4], 4294967280 }
  0x40   :  { %161 = dma.done.wait [#allocation7], 16  }
  0x41   :  { %162 = vsyncadd [#allocation7], 4294967280 }
  0x42   :  { %82 = vsyncpa [#allocation3], 1 }
  0x43   :  { %83 = vsyncpa [#allocation4], 1 }
  0x44   :  { %84 = vsyncpa [#allocation7], 1 }

</bundles_post_ra>
